<compile_context>
chip_gen: v7x
topology: tpu7x:2x2x1
jax: 0.10.0
libtpu: 0.0.40
codegen_flags: <defaults>
</compile_context>

<pallas_src>
import jax
import jax.numpy as jnp
from jax import lax
from jax.experimental import pallas as pl
from jax.experimental.pallas import tpu as pltpu


def _critic_kernel(a_ref, s_ref, w1a_ref, w1s_ref, b1_ref, w2_ref, b2_ref,
                   w3_ref, b3_ref, out_ref):
    # a_ref: (TILE_B, action_dim), s_ref: (TILE_B, state_dim).
    # Everything downstream is transposed: batch lives on the lane axis.

    # Layer 1: h1 = W1a @ a^T + W1s @ s^T + b1, ReLU.            (hid, TILE_B)
    # Contract on the feature (last) axis of the activation tile, i.e. an
    # rhs-transposed matmul -> no explicit in-kernel transpose materialized.
    dn = (((1,), (1,)), ((), ()))
    h1 = lax.dot_general(w1a_ref[...], a_ref[...], dn,
                         preferred_element_type=jnp.float32)
    h1 = h1 + lax.dot_general(w1s_ref[...], s_ref[...], dn,
                              preferred_element_type=jnp.float32)
    h1 = jnp.maximum(h1 + b1_ref[...], 0.0)

    # Layer 2: Linear + Tanh.                                     (hid, TILE_B)
    h2 = jnp.dot(w2_ref[...], h1.astype(w2_ref.dtype),
                 preferred_element_type=jnp.float32)
    h2 = jnp.tanh(h2 + b2_ref[...])

    # Output layer: single output row -> keep it off the MXU (255/256 of an
    # MXU pass would be wasted).  VPU broadcast-mul + XLU sublane reduce.
    q = jnp.sum(w3_ref[...].astype(jnp.float32) * h2, axis=0, keepdims=True)
    out_ref[...] = q + b3_ref[...]                               # (1, TILE_B)


def _pick_tile_b(batch, target=16384):
    """Large tile to amortize per-step overhead; clamp for small batches;
    keep >= 2 tiles when possible so v7x's 2 TensorCores both get work."""
    b128 = pl.cdiv(batch, 128) * 128
    if b128 <= 128:
        return 128
    n_tiles = max(2, pl.cdiv(b128, target))
    return pl.cdiv(pl.cdiv(b128, n_tiles), 128) * 128


def critic_forward(action, state, w1, b1, w2, b2, w3, b3, *,
                   tile_b=None, compute_dtype=jnp.float32):
    """action: (B, action_dim), state: (B, state_dim).
    Weights in PyTorch (out_features, in_features) layout; biases 1-D or
    column vectors.  Returns Q-values of shape (B, 1), float32."""
    action = jnp.asarray(action)
    state = jnp.asarray(state)
    B, action_dim = action.shape
    _, state_dim = state.shape
    input_dim = action_dim + state_dim
    hid = w1.shape[0]

    cdt = jnp.dtype(compute_dtype)
    # Tiny one-time weight prep (no per-row activation passes in the wrapper):
    #   split W1 columns so action/state never need a wrapper-side concat,
    #   keep W3 as a (hid, 1) column for the transposed layer-3 reduction.
    w1a = w1[:, :action_dim].astype(cdt)
    w1s = w1[:, action_dim:].astype(cdt)
    w2c = w2.astype(cdt)
    w3c = w3.reshape(1, hid).T.astype(cdt)              # (hid, 1)
    b1c = b1.reshape(hid, 1).astype(jnp.float32)
    b2c = b2.reshape(hid, 1).astype(jnp.float32)
    b3c = b3.reshape(1, 1).astype(jnp.float32)
    action = action.astype(cdt)
    state = state.astype(cdt)

    if tile_b is None:
        tile_b = _pick_tile_b(B)
    else:
        tile_b = max(128, pl.cdiv(tile_b, 128) * 128)
    grid = (pl.cdiv(B, tile_b),)

    def pinned(arr):
        # Full-array block, constant index map -> stays VMEM-resident.
        return pl.BlockSpec(arr.shape, lambda i: (0,) * arr.ndim)

    n_weight_bytes = sum(int(a.size) * a.dtype.itemsize
                         for a in (w1a, w1s, b1c, w2c, b2c, w3c, b3c))
    cost = pl.CostEstimate(
        flops=2 * B * (input_dim * hid + hid * hid + hid),
        transcendentals=B * hid,
        bytes_accessed=cdt.itemsize * B * input_dim + 4 * B + n_weight_bytes,
    )

    outT = pl.pallas_call(
        _critic_kernel,
        out_shape=jax.ShapeDtypeStruct((1, B), jnp.float32),
        grid=grid,
        in_specs=[
            pl.BlockSpec((tile_b, action_dim), lambda i: (i, 0)),
            pl.BlockSpec((tile_b, state_dim), lambda i: (i, 0)),
            pinned(w1a), pinned(w1s), pinned(b1c),
            pinned(w2c), pinned(b2c),
            pinned(w3c), pinned(b3c),
        ],
        out_specs=pl.BlockSpec((1, tile_b), lambda i: (0, i)),
        compiler_params=pltpu.CompilerParams(
            dimension_semantics=("parallel",),
        ),
        cost_estimate=cost,
    )(action, state, w1a, w1s, b1c, w2c, b2c, w3c, b3c)

    # (1, B) -> (B, 1), matching the PyTorch module.
    return outT.T


def init_params(key, input_dim, hid_dim=32):
    """nn.Linear-style init (uniform +-1/sqrt(fan_in)), PyTorch layouts:
    weights (out, in), biases (out,)."""
    ks = jax.random.split(key, 6)

    def linear(kw, kb, fan_in, fan_out):
        bound = 1.0 / jnp.sqrt(fan_in)
        w = jax.random.uniform(kw, (fan_out, fan_in), jnp.float32, -bound, bound)
        b = jax.random.uniform(kb, (fan_out,), jnp.float32, -bound, bound)
        return w, b

    w1, b1 = linear(ks[0], ks[1], input_dim, hid_dim)
    w2, b2 = linear(ks[2], ks[3], hid_dim, hid_dim)
    w3, b3 = linear(ks[4], ks[5], hid_dim, 1)
    return w1, b1, w2, b2, w3, b3


if __name__ == "__main__":
    key = jax.random.PRNGKey(0)
    k_a, k_s, k_p = jax.random.split(key, 3)

    batch = 2
    action_dim = 8
    state_dim = 16
    hid_dim = 32
    input_dim = action_dim + state_dim

    action = jax.random.normal(k_a, (batch, action_dim), jnp.float32)
    state = jax.random.normal(k_s, (batch, state_dim), jnp.float32)
    params = init_params(k_p, input_dim, hid_dim)

    out = critic_forward(action, state, *params)
    jax.block_until_ready(out)

    # Pure-JAX reference (standard (B, F) layout, PyTorch semantics).
    w1, b1, w2, b2, w3, b3 = params
    x = jnp.concatenate([action, state], axis=-1)
    h1 = jnp.maximum(x @ w1.T + b1, 0.0)
    h2 = jnp.tanh(h1 @ w2.T + b2)
    ref = h2 @ w3.T + b3

    assert out.shape == (batch, 1), out.shape
    assert jnp.allclose(out, ref, atol=2e-5, rtol=2e-5), (
        float(jnp.max(jnp.abs(out - ref))))

    print("KERNEL_OK")
</pallas_src>

<mosaic_0001>
module attributes {stable_mosaic.version = 11 : i64} {
  func.func @_critic_kernel(%arg0: i32, %arg1: memref<128x8xf32, #tpu.memory_space<vmem>>, %arg2: memref<128x16xf32, #tpu.memory_space<vmem>>, %arg3: memref<32x8xf32, #tpu.memory_space<vmem>>, %arg4: memref<32x16xf32, #tpu.memory_space<vmem>>, %arg5: memref<32x1xf32, #tpu.memory_space<vmem>>, %arg6: memref<32x32xf32, #tpu.memory_space<vmem>>, %arg7: memref<32x1xf32, #tpu.memory_space<vmem>>, %arg8: memref<32x1xf32, #tpu.memory_space<vmem>>, %arg9: memref<1x1xf32, #tpu.memory_space<vmem>>, %arg10: memref<1x128xf32, #tpu.memory_space<vmem>>) attributes {dimension_semantics = [#tpu.dimension_semantics<parallel>], iteration_bounds = array<i64: 1>, scalar_prefetch = 0 : i64, scratch_operands = 0 : i64, tpu.core_type = #tpu.core_type<tc>, window_params = [{transform_indices = @transform_0, window_bounds = array<i64: 128, 8>}, {transform_indices = @transform_1, window_bounds = array<i64: 128, 16>}, {pipeline_mode = #tpu.pipeline_mode<synchronous>, transform_indices = @transform_2, window_bounds = array<i64: 32, 8>}, {pipeline_mode = #tpu.pipeline_mode<synchronous>, transform_indices = @transform_3, window_bounds = array<i64: 32, 16>}, {pipeline_mode = #tpu.pipeline_mode<synchronous>, transform_indices = @transform_4, window_bounds = array<i64: 32, 1>}, {pipeline_mode = #tpu.pipeline_mode<synchronous>, transform_indices = @transform_5, window_bounds = array<i64: 32, 32>}, {pipeline_mode = #tpu.pipeline_mode<synchronous>, transform_indices = @transform_6, window_bounds = array<i64: 32, 1>}, {pipeline_mode = #tpu.pipeline_mode<synchronous>, transform_indices = @transform_7, window_bounds = array<i64: 32, 1>}, {pipeline_mode = #tpu.pipeline_mode<synchronous>, transform_indices = @transform_8, window_bounds = array<i64: 1, 1>}, {transform_indices = @transform_9, window_bounds = array<i64: 1, 128>}]} {
    %c0 = arith.constant 0 : index
    %c0_0 = arith.constant 0 : index
    %0 = vector.load %arg3[%c0, %c0_0] : memref<32x8xf32, #tpu.memory_space<vmem>>, vector<32x8xf32>
    %c0_1 = arith.constant 0 : index
    %c0_2 = arith.constant 0 : index
    %1 = vector.load %arg1[%c0_1, %c0_2] : memref<128x8xf32, #tpu.memory_space<vmem>>, vector<128x8xf32>
    %cst = arith.constant dense<0.000000e+00> : vector<32x128xf32>
    %2 = tpu.matmul %0, %1, %cst {dimension_numbers = #tpu.dot_dimension_numbers<[1], [1], [0], [0], [0, 0, 1, 0], [], []>} : vector<32x8xf32>, vector<128x8xf32>, vector<32x128xf32> -> vector<32x128xf32>
    %c0_3 = arith.constant 0 : index
    %c0_4 = arith.constant 0 : index
    %3 = vector.load %arg4[%c0_3, %c0_4] : memref<32x16xf32, #tpu.memory_space<vmem>>, vector<32x16xf32>
    %c0_5 = arith.constant 0 : index
    %c0_6 = arith.constant 0 : index
    %4 = vector.load %arg2[%c0_5, %c0_6] : memref<128x16xf32, #tpu.memory_space<vmem>>, vector<128x16xf32>
    %cst_7 = arith.constant dense<0.000000e+00> : vector<32x128xf32>
    %5 = tpu.matmul %3, %4, %cst_7 {dimension_numbers = #tpu.dot_dimension_numbers<[1], [1], [0], [0], [0, 0, 1, 0], [], []>} : vector<32x16xf32>, vector<128x16xf32>, vector<32x128xf32> -> vector<32x128xf32>
    %6 = arith.addf %2, %5 : vector<32x128xf32>
    %c0_8 = arith.constant 0 : index
    %c0_9 = arith.constant 0 : index
    %7 = vector.load %arg5[%c0_8, %c0_9] : memref<32x1xf32, #tpu.memory_space<vmem>>, vector<32x1xf32>
    %8 = vector.broadcast %7 : vector<32x1xf32> to vector<32x128xf32>
    %9 = arith.addf %6, %8 : vector<32x128xf32>
    %cst_10 = arith.constant 0.000000e+00 : f32
    %10 = vector.broadcast %cst_10 : f32 to vector<32x128xf32>
    %11 = arith.maximumf %9, %10 : vector<32x128xf32>
    %c0_11 = arith.constant 0 : index
    %c0_12 = arith.constant 0 : index
    %12 = vector.load %arg6[%c0_11, %c0_12] : memref<32x32xf32, #tpu.memory_space<vmem>>, vector<32x32xf32>
    %cst_13 = arith.constant dense<0.000000e+00> : vector<32x128xf32>
    %13 = tpu.matmul %12, %11, %cst_13 {dimension_numbers = #tpu.dot_dimension_numbers<[1], [0], [0], [1], [0, 0, 1, 1], [], []>} : vector<32x32xf32>, vector<32x128xf32>, vector<32x128xf32> -> vector<32x128xf32>
    %c0_14 = arith.constant 0 : index
    %c0_15 = arith.constant 0 : index
    %14 = vector.load %arg7[%c0_14, %c0_15] : memref<32x1xf32, #tpu.memory_space<vmem>>, vector<32x1xf32>
    %15 = vector.broadcast %14 : vector<32x1xf32> to vector<32x128xf32>
    %16 = arith.addf %13, %15 : vector<32x128xf32>
    %17 = math.tanh %16 : vector<32x128xf32>
    %c0_16 = arith.constant 0 : index
    %c0_17 = arith.constant 0 : index
    %18 = vector.load %arg8[%c0_16, %c0_17] : memref<32x1xf32, #tpu.memory_space<vmem>>, vector<32x1xf32>
    %19 = vector.broadcast %18 : vector<32x1xf32> to vector<32x128xf32>
    %20 = arith.mulf %19, %17 : vector<32x128xf32>
    %cst_18 = arith.constant dense<0.000000e+00> : vector<128xf32>
    %21 = vector.multi_reduction <add>, %20, %cst_18 [0] : vector<32x128xf32> to vector<128xf32>
    %22 = vector.shape_cast %21 : vector<128xf32> to vector<1x128xf32>
    %c0_19 = arith.constant 0 : index
    %c0_20 = arith.constant 0 : index
    %23 = vector.load %arg9[%c0_19, %c0_20] : memref<1x1xf32, #tpu.memory_space<vmem>>, vector<1x1xf32>
    %24 = vector.broadcast %23 : vector<1x1xf32> to vector<1x128xf32>
    %25 = arith.addf %22, %24 : vector<1x128xf32>
    %c0_21 = arith.constant 0 : index
    %c0_22 = arith.constant 0 : index
    %26 = vector.load %arg10[%c0_21, %c0_22] : memref<1x128xf32, #tpu.memory_space<vmem>>, vector<1x128xf32>
    tpu.vector_store %arg10[%c0_21, %c0_22], %25 {strides = array<i32>} : memref<1x128xf32, #tpu.memory_space<vmem>>, vector<1x128xf32>,
    return
  }
  func.func @transform_0(%arg0: i32) -> (i32, i32) {
    %c0_i32 = arith.constant 0 : i32
    %c0_i32_0 = arith.constant 0 : i32
    return %arg0, %c0_i32 : i32, i32
  }
  func.func @transform_1(%arg0: i32) -> (i32, i32) {
    %c0_i32 = arith.constant 0 : i32
    %c0_i32_0 = arith.constant 0 : i32
    return %arg0, %c0_i32 : i32, i32
  }
  func.func @transform_2(%arg0: i32) -> (i32, i32) {
    %c0_i32 = arith.constant 0 : i32
    %c0_i32_0 = arith.constant 0 : i32
    %c0_i32_1 = arith.constant 0 : i32
    return %c0_i32, %c0_i32_0 : i32, i32
  }
  func.func @transform_3(%arg0: i32) -> (i32, i32) {
    %c0_i32 = arith.constant 0 : i32
    %c0_i32_0 = arith.constant 0 : i32
    %c0_i32_1 = arith.constant 0 : i32
    return %c0_i32, %c0_i32_0 : i32, i32
  }
  func.func @transform_4(%arg0: i32) -> (i32, i32) {
    %c0_i32 = arith.constant 0 : i32
    %c0_i32_0 = arith.constant 0 : i32
    %c0_i32_1 = arith.constant 0 : i32
    return %c0_i32, %c0_i32_0 : i32, i32
  }
  func.func @transform_5(%arg0: i32) -> (i32, i32) {
    %c0_i32 = arith.constant 0 : i32
    %c0_i32_0 = arith.constant 0 : i32
    %c0_i32_1 = arith.constant 0 : i32
    return %c0_i32, %c0_i32_0 : i32, i32
  }
  func.func @transform_6(%arg0: i32) -> (i32, i32) {
    %c0_i32 = arith.constant 0 : i32
    %c0_i32_0 = arith.constant 0 : i32
    %c0_i32_1 = arith.constant 0 : i32
    return %c0_i32, %c0_i32_0 : i32, i32
  }
  func.func @transform_7(%arg0: i32) -> (i32, i32) {
    %c0_i32 = arith.constant 0 : i32
    %c0_i32_0 = arith.constant 0 : i32
    %c0_i32_1 = arith.constant 0 : i32
    return %c0_i32, %c0_i32_0 : i32, i32
  }
  func.func @transform_8(%arg0: i32) -> (i32, i32) {
    %c0_i32 = arith.constant 0 : i32
    %c0_i32_0 = arith.constant 0 : i32
    %c0_i32_1 = arith.constant 0 : i32
    return %c0_i32, %c0_i32_0 : i32, i32
  }
  func.func @transform_9(%arg0: i32) -> (i32, i32) {
    %c0_i32 = arith.constant 0 : i32
    %c0_i32_0 = arith.constant 0 : i32
    return %c0_i32, %arg0 : i32, i32
  }
}

</mosaic_0001>

<bundles_post_ra>
// kernel: tpu_custom_call.1
= control target key start
LH: loop header
LB: loop body
LE: loop exit
PB: predicated region body
PF: predicated region fallthrough
CT: control target
= control target key end

     0   :  { %s1245_s0 = inlined_call_operand.vmem [shape: f32[2,8], index: 0, kind: input, shape index: {}]   ;;  %s1246_s1 = inlined_call_operand.vmem [shape: f32[2,16], index: 1, kind: input, shape index: {}]   ;;  %s1247_s2 = inlined_call_operand.vmem [shape: f32[32,8], index: 2, kind: input, shape index: {}]   ;;  %s1248_s3 = inlined_call_operand.vmem [shape: f32[32,16], index: 3, kind: input, shape index: {}]   ;;  %s1249_s4 = inlined_call_operand.vmem [shape: f32[32,1], index: 4, kind: input, shape index: {}]   ;;  %s1250_s5 = inlined_call_operand.vmem [shape: f32[32,32], index: 5, kind: input, shape index: {}]   ;;  %s1251_s6 = inlined_call_operand.vmem [shape: f32[32,1], index: 6, kind: input, shape index: {}]   ;;  %s1252_s7 = inlined_call_operand.vmem [shape: f32[32,1], index: 7, kind: input, shape index: {}]   ;;  %s1253_s8 = inlined_call_operand.<no memory space> [shape: f32[1,1], index: 8, kind: input, shape index: {}]   ;;  %s1254_s9 = inlined_call_operand.hbm [shape: f32[1,2], index: 9, kind: output, shape index: {}]  }
   0x1   :  { %v14_v0 = vstv %s1253_s8 }
   0x2   :  { %15 = vst [vmem:[#allocation2] sm:$0x1] %v14_v0 }
   0x3   :  { %v59_v1 = vld [vmem:[%s1246_s1] sm:$0xff]  ;;  %v60_v2 = vld [vmem:[%s1246_s1 + $0x8] sm:$0xff]  ;;  %vm75_vm0 = vcmask 130048   ;;  %vm221_vm1 = vcmask 64512   ;;  %v61_v7 = vld [vmem:[%s1246_s1 + $0x10] sm:$0xff]  ;;  %v922_v8 = vmov 0  }
   0x4   :  { %v39_v3 = vld [vmem:[%s1245_s0] sm:$0xff]  ;;  %v774_v4 = vpack.c.bf16 %v60_v2, %v59_v1  ;;  %vm988_vm2 = vmpackc.low %vm75_vm0, %vm75_vm0  ;;  %v40_v6 = vld [vmem:[%s1245_s0 + $0x8] sm:$0xff]  ;;  %888 = vset.pattern.permute.xlu0 %v922_v8  ;;  %889 = vset.pattern.permute.xlu1 %v922_v8 }
   0x5   :  { %v822_v9 = vpack.c.bf16 %v40_v6, %v39_v3  ;;  %vm1000_vm3 = vmpackc.low %vm221_vm1, %vm221_vm1  ;;  %v62_v11 = vld [vmem:[%s1246_s1 + $0x18] sm:$0xff]  ;;  %v41_v12 = vld [vmem:[%s1245_s0 + $0x10] sm:$0xff] }
   0x6   :  { %776 = vmatprep.subr.msk.bf16.mxu1 %vm988_vm2, %v774_v4  ;;  %v780_v13 = vpack.c.bf16 %v62_v11, %v61_v7  ;;  %v42_v14 = vld [vmem:[%s1245_s0 + $0x18] sm:$0xff]  ;;  %v63_v16 = vld [vmem:[%s1246_s1 + $0x20] sm:$0xff]  ;;  %v64_v17 = vld [vmem:[%s1246_s1 + $0x28] sm:$0xff] }
   0x7   :  { %824 = vmatprep.subr.msk.bf16.mxu0 %vm1000_vm3, %v822_v9  ;;  %779 = vmatpush3.bf16.xpose.msk.msra.mxu1 %vm988_vm2, %v774_v4  ;;  %v828_v15 = vpack.c.bf16 %v42_v14, %v41_v12  ;;  %v43_v18 = vld [vmem:[%s1245_s0 + $0x20] sm:$0xff]  ;;  %v44_v19 = vld [vmem:[%s1245_s0 + $0x28] sm:$0xff]  ;;  %v786_v20 = vpack.c.bf16 %v64_v17, %v63_v16  ;;  %v65_v24 = vld [vmem:[%s1246_s1 + $0x30] sm:$0xff] }
   0x8   :  { %827 = vmatpush3.bf16.xpose.msk.msra.mxu0 %vm1000_vm3, %v822_v9  ;;  %782 = vmatprep.subr.msk.bf16.mxu1 %vm988_vm2, %v780_v13  ;;  %v834_v21 = vpack.c.bf16 %v44_v19, %v43_v18  ;;  %v55_v22 = vld [vmem:[%s1248_s3] sm:$0xff]  ;;  %v66_v25 = vld [vmem:[%s1246_s1 + $0x38] sm:$0xff]  ;;  %v369_v27 = vld [vmem:[%s1249_s4 + $0x10] sm:$0xff] }
   0x9   :  { %830 = vmatprep.subr.msk.bf16.mxu0 %vm1000_vm3, %v828_v15  ;;  %v35_v23 = vld [vmem:[%s1247_s2] sm:$0xff]  ;;  %716 = vmatprep.mubr.msk.f32.mxu1 %vm75_vm0, %v55_v22  ;;  %v45_v28 = vld [vmem:[%s1245_s0 + $0x30] sm:$0xff]  ;;  %v46_v29 = vld [vmem:[%s1245_s0 + $0x38] sm:$0xff]  ;;  %v792_v32 = vpack.c.bf16 %v66_v25, %v65_v24 }
   0xa   :  { %754 = vmatprep.mubr.msk.f32.mxu0 %vm221_vm1, %v35_v23  ;;  %v367_v26 = vld [vmem:[%s1249_s4] sm:$0xff]  ;;  %383 = vperm.xlu1 %889, %v369_v27   ;;  %v368_v30 = vld [vmem:[%s1249_s4 + $0x8] sm:$0xff]  ;;  %v370_v31 = vld [vmem:[%s1249_s4 + $0x18] sm:$0xff]  ;;  %v840_v33 = vpack.c.bf16 %v46_v29, %v45_v28 }
   0xb   :  { %373 = vperm.xlu0 %888, %v367_v26  }
   0xf   :  { %785 = vmatpush3.bf16.xpose.msk.msra.mxu1 %vm988_vm2, %v780_v13 }
  0x10   :  { %833 = vmatpush3.bf16.xpose.msk.msra.mxu0 %vm1000_vm3, %v828_v15  ;;  %788 = vmatprep.subr.msk.bf16.mxu1 %vm988_vm2, %v786_v20 }
  0x11   :  { %836 = vmatprep.subr.msk.bf16.mxu0 %vm1000_vm3, %v834_v21 }
  0x12   :  { %16 = vsyncpa [#allocation4], 0  ;;  %378 = vperm.xlu0 %888, %v368_v30   ;;  %388 = vperm.xlu1 %889, %v370_v31   ;;  %v403_v34 = vld [vmem:[%s1251_s6] sm:$0xff]  ;;  %v404_v35 = vld [vmem:[%s1251_s6 + $0x8] sm:$0xff]  ;;  %vm427_vm4 = vcmask 261120  }
  0x13   :  { %v67_v36 = vld [vmem:[%s1246_s1 + $0x40] sm:$0xff]  ;;  %v68_v37 = vld [vmem:[%s1246_s1 + $0x48] sm:$0xff]  ;;  %v405_v40 = vld [vmem:[%s1251_s6 + $0x10] sm:$0xff] }
  0x14   :  { %v47_v38 = vld [vmem:[%s1245_s0 + $0x40] sm:$0xff]  ;;  %v48_v39 = vld [vmem:[%s1245_s0 + $0x48] sm:$0xff]  ;;  %v406_v41 = vld [vmem:[%s1251_s6 + $0x18] sm:$0xff]  ;;  %v798_v42 = vpack.c.bf16 %v68_v37, %v67_v36 }
  0x15   :  { %v846_v43 = vpack.c.bf16 %v48_v39, %v47_v38  ;;  %v529_v44 = vld [vmem:[%s1252_s7] sm:$0xff]  ;;  %v530_v45 = vld [vmem:[%s1252_s7 + $0x8] sm:$0xff]  ;;  %v69_v46 = vld [vmem:[%s1246_s1 + $0x50] sm:$0xff] }
  0x16   :  { %409 = vperm.xlu0 %888, %v403_v34   ;;  %414 = vperm.xlu1 %889, %v404_v35   ;;  %v70_v47 = vld [vmem:[%s1246_s1 + $0x58] sm:$0xff]  ;;  %v49_v48 = vld [vmem:[%s1245_s0 + $0x50] sm:$0xff]  ;;  %v566_v54 = vld [vmem:[#allocation2] sm:$0x1] }
  0x17   :  { %791 = vmatpush3.bf16.xpose.msk.msra.mxu1 %vm988_vm2, %v786_v20  ;;  %v50_v49 = vld [vmem:[%s1245_s0 + $0x58] sm:$0xff]  ;;  %v531_v50 = vld [vmem:[%s1252_s7 + $0x10] sm:$0xff]  ;;  %v804_v52 = vpack.c.bf16 %v70_v47, %v69_v46  ;;  %v71_v55 = vld [vmem:[%s1246_s1 + $0x60] sm:$0xff] }
  0x18   :  { %839 = vmatpush3.bf16.xpose.msk.msra.mxu0 %vm1000_vm3, %v834_v21  ;;  %794 = vmatprep.subr.msk.bf16.mxu1 %vm988_vm2, %v792_v32  ;;  %v532_v51 = vld [vmem:[%s1252_s7 + $0x18] sm:$0xff]  ;;  %v852_v53 = vpack.c.bf16 %v50_v49, %v49_v48  ;;  %v72_v56 = vld [vmem:[%s1246_s1 + $0x68] sm:$0xff]  ;;  %v51_v57 = vld [vmem:[%s1245_s0 + $0x60] sm:$0xff] }
  0x19   :  { %842 = vmatprep.subr.msk.bf16.mxu0 %vm1000_vm3, %v840_v33  ;;  %v52_v58 = vld [vmem:[%s1245_s0 + $0x68] sm:$0xff]  ;;  %v810_v59 = vpack.c.bf16 %v72_v56, %v71_v55  ;;  %v73_v61 = vld [vmem:[%s1246_s1 + $0x70] sm:$0xff]  ;;  %v74_v62 = vld [vmem:[%s1246_s1 + $0x78] sm:$0xff] }
  0x1a   :  { %419 = vperm.xlu0 %888, %v405_v40   ;;  %424 = vperm.xlu1 %889, %v406_v41   ;;  %v858_v60 = vpack.c.bf16 %v52_v58, %v51_v57  ;;  %v53_v63 = vld [vmem:[%s1245_s0 + $0x70] sm:$0xff]  ;;  %v54_v0 = vld [vmem:[%s1245_s0 + $0x78] sm:$0xff]  ;;  %v816_v1 = vpack.c.bf16 %v74_v62, %v73_v61  ;;  %v56_v3 = vld [vmem:[%s1248_s3 + $0x8] sm:$0xff] }
  0x1b   :  { %v864_v2 = vpack.c.bf16 %v54_v0, %v53_v63  ;;  %v36_v4 = vld [vmem:[%s1247_s2 + $0x8] sm:$0xff]  ;;  %v57_v6 = vld [vmem:[%s1248_s3 + $0x10] sm:$0xff]  ;;  %v58_v7 = vld [vmem:[%s1248_s3 + $0x18] sm:$0xff] }
  0x1c   :  { %v37_v5 = vld [vmem:[%s1247_s2 + $0x10] sm:$0xff]  ;;  %v38_v8 = vld [vmem:[%s1247_s2 + $0x18] sm:$0xff]  ;;  %v399_v9 = vld [vmem:[%s1250_s5] sm:$0xff] }
  0x1d   :  { %v401_v10 = vld [vmem:[%s1250_s5 + $0x10] sm:$0xff]  ;;  %v400_v37 = vld [vmem:[%s1250_s5 + $0x8] sm:$0xff]  ;;  %v402_v38 = vld [vmem:[%s1250_s5 + $0x18] sm:$0xff]  ;;  %s923_s5 = smov [#allocation3]  }
  0x1e   :  { %535 = vperm.xlu0 %888, %v529_v44   ;;  %540 = vperm.xlu1 %889, %v530_v45   ;;  %s584_s23 = sshll.u32 %s923_s5, 4  ;;  %s585_s23 = int_to_ptr.vmem [resolvable:$true] %s584_s23 }
  0x1f   :  { %797 = vmatpush3.bf16.xpose.msk.msra.mxu1 %vm988_vm2, %v792_v32  ;;  %s898_s24 = scalar_lea.vmem %s585_s23, 16  ;;  %s902_s25 = scalar_lea.vmem %s585_s23, 32 }
  0x20   :  { %845 = vmatpush3.bf16.xpose.msk.msra.mxu0 %vm1000_vm3, %v840_v33  ;;  %800 = vmatprep.subr.msk.bf16.mxu1 %vm988_vm2, %v798_v42  ;;  %p899_p0 = scmp.ne.s32.totalorder %s585_s23, %s898_s24  ;;  %p903_p1 = scmp.lt.s32.totalorder %s585_s23, %s585_s23 }
  0x21   :  { %848 = vmatprep.subr.msk.bf16.mxu0 %vm1000_vm3, %v846_v43  ;;  %p904_p2 = scmp.lt.s32.totalorder %s902_s25, %s898_s24 }
  0x22   :  { %545 = vperm.xlu0 %888, %v531_v50   ;;  %550 = vperm.xlu1 %889, %v532_v51  }
  0x23   :  { %p905_p3 = por %p904_p2, %p903_p1 }
  0x25   :  { %p906_p4 = pnand %p905_p3, %p899_p0 }
  0x26   :  { %569 = vperm.xlu0 %888, %v566_v54  }
  0x27   :  { %803 = vmatpush3.bf16.xpose.msk.msra.mxu1 %vm988_vm2, %v798_v42 }
  0x28   :  { %851 = vmatpush3.bf16.xpose.msk.msra.mxu0 %vm1000_vm3, %v846_v43  ;;  %806 = vmatprep.subr.msk.bf16.mxu1 %vm988_vm2, %v804_v52 }
  0x29   :  { %854 = vmatprep.subr.msk.bf16.mxu0 %vm1000_vm3, %v852_v53 }
  0x2f   :  { %809 = vmatpush3.bf16.xpose.msk.msra.mxu1 %vm988_vm2, %v804_v52 }
  0x30   :  { %857 = vmatpush3.bf16.xpose.msk.msra.mxu0 %vm1000_vm3, %v852_v53  ;;  %812 = vmatprep.subr.msk.bf16.mxu1 %vm988_vm2, %v810_v59 }
  0x31   :  { %860 = vmatprep.subr.msk.bf16.mxu0 %vm1000_vm3, %v858_v60 }
  0x37   :  { %815 = vmatpush3.bf16.xpose.msk.msra.mxu1 %vm988_vm2, %v810_v59 }
  0x38   :  { %863 = vmatpush3.bf16.xpose.msk.msra.mxu0 %vm1000_vm3, %v858_v60  ;;  %818 = vmatprep.subr.msk.bf16.mxu1 %vm988_vm2, %v816_v1 }
  0x39   :  { %866 = vmatprep.subr.msk.bf16.mxu0 %vm1000_vm3, %v864_v2 }
  0x3f   :  { %821 = vmatpush3.bf16.xpose.msk.msra.mxu1 %vm988_vm2, %v816_v1  ;;  %v572_v1 = vlaneseq }
  0x40   :  { %869 = vmatpush3.bf16.xpose.msk.msra.mxu0 %vm1000_vm3, %v864_v2 }
  0x46   :  { %717 = vmatmul.mubr.msk.f32.vlgmr.msra.gmra.mrb[0].mxu1 %vm75_vm0, %v56_v3 }
  0x47   :  { %755 = vmatmul.mubr.msk.f32.vlgmr.msra.gmra.mrb[0].mxu0 %vm221_vm1, %v36_v4  ;;  %719 = vmatprep.mubr.msk.f32.mxu1 %vm75_vm0, %v57_v6  ;;  %v573_v4 = vshrl.u32 %v572_v1, 7 }
  0x48   :  { %757 = vmatprep.mubr.msk.f32.mxu0 %vm221_vm1, %v37_v5 }
  0x4a   :  { %720 = vmatmul.mubr.msk.f32.gmra.mrb[2].mxu1 %vm75_vm0, %v58_v7  ;;  %v574_v7 = vsub.s32 0, %v573_v4 }
  0x4b   :  { %758 = vmatmul.mubr.msk.f32.gmra.mrb[2].mxu0 %vm221_vm1, %v38_v8  ;;  %771 = vmatprep.mubr.msk.f32.mxu1 %vm427_vm4, %v401_v10 }
  0x4c   :  { %768 = vmatprep.mubr.msk.f32.mxu0 %vm427_vm4, %v399_v9 }
  0x89   :  { %v384_v12 = vpop.permute.xlu1 %383 }
  0x8a   :  { %v374_v11 = vpop.permute.xlu0 %373 }
  0x91   :  { %v379_v18 = vpop.permute.xlu0 %378  ;;  %v389_v28 = vpop.permute.xlu1 %388 }
  0x95   :  { %v410_v39 = vpop.permute.xlu0 %409  ;;  %v415_v40 = vpop.permute.xlu1 %414 }
  0x99   :  { %v420_v41 = vpop.permute.xlu0 %419  ;;  %v425_v47 = vpop.permute.xlu1 %424 }
  0x9d   :  { %v536_v51 = vpop.permute.xlu0 %535  ;;  %v541_v53 = vpop.permute.xlu1 %540 }
  0xa1   :  { %v546_v59 = vpop.permute.xlu0 %545  ;;  %v551_v62 = vpop.permute.xlu1 %550 }
  0xa5   :  { %v570_v9 = vpop.permute.xlu0 %569 }
 0x119   :  { %v718_v13 = vpop.f32.mrb[0].mxu1 }
 0x11a   :  { %v756_v14 = vpop.f32.mrb[0].mxu0  ;;  %v202_v15 = vpop.f32.mrb[1].mxu1 }
 0x11b   :  { %v354_v16 = vadd.f32 %v756_v14, %v718_v13  ;;  %v348_v17 = vpop.f32.mrb[1].mxu0 }
 0x11c   :  { %v349_v19 = vadd.f32 %v348_v17, %v202_v15 }
 0x11d   :  { %v392_v20 = vadd.f32 %v379_v18, %v354_v16  ;;  %v721_v21 = vpop.f32.mrb[2].mxu1 }
 0x11e   :  { %v391_v22 = vadd.f32 %v374_v11, %v349_v19  ;;  %v759_v23 = vpop.f32.mrb[2].mxu0  ;;  %v212_v24 = vpop.f32.mrb[3].mxu1  ;;  %v575_v11 = vrot.slane %v570_v9, %v574_v7 }
 0x11f   :  { %v396_v25 = vmax.f32 %v392_v20, 0.0  ;;  %v364_v26 = vadd.f32 %v759_v23, %v721_v21  ;;  %v358_v27 = vpop.f32.mrb[3].mxu0 }
 0x120   :  { %v395_v29 = vmax.f32 %v391_v22, 0.0  ;;  %v359_v30 = vadd.f32 %v358_v27, %v212_v24 }
 0x121   :  { %v394_v31 = vadd.f32 %v389_v28, %v364_v26 }
 0x122   :  { %v870_v32 = vpack.c.bf16 %v396_v25, %v395_v29  ;;  %v393_v33 = vadd.f32 %v384_v12, %v359_v30 }
 0x123   :  { %v398_v34 = vmax.f32 %v394_v31, 0.0 }
 0x124   :  { %v397_v35 = vmax.f32 %v393_v33, 0.0  ;;  %871 = vmatprep.subr.bf16.mxu0 %v870_v32  ;;  %878 = vmatprep.subr.bf16.mxu1 %v870_v32 }
 0x125   :  { %873 = vmatpush3.bf16.msra.mxu0 %v870_v32  ;;  %880 = vmatpush3.bf16.msra.mxu1 %v870_v32 }
 0x126   :  { %v874_v36 = vpack.c.bf16 %v398_v34, %v397_v35 }
 0x128   :  { %875 = vmatprep.subr.bf16.mxu0 %v874_v36  ;;  %879 = vmatprep.subr.bf16.mxu1 %v874_v36 }
 0x129   :  { %877 = vmatpush3.bf16.msra.mxu0 %v874_v36  ;;  %881 = vmatpush3.bf16.msra.mxu1 %v874_v36 }
 0x12c   :  { %769 = vmatmul.mubr.msk.f32.vlgmr.msra.gmra.mrb[4].mxu0 %vm427_vm4, %v400_v37  ;;  %772 = vmatmul.mubr.msk.f32.vlgmr.msra.gmra.mrb[4].mxu1 %vm427_vm4, %v402_v38 }
 0x1ff   :  { %v770_v42 = vpop.f32.mrb[4].mxu0  ;;  %v773_v43 = vpop.f32.mrb[4].mxu1 }
 0x200   :  { %v512_v44 = vadd.f32 %v770_v42, %v415_v40  ;;  %v506_v45 = vpop.f32.mrb[5].mxu0  ;;  %v516_v46 = vpop.f32.mrb[5].mxu1  ;;  %v522_v50 = vadd.f32 %v773_v43, %v425_v47 }
 0x201   :  { %v507_v48 = vadd.f32 %v506_v45, %v410_v39  ;;  %v517_v49 = vadd.f32 %v516_v46, %v420_v41 }
 0x202   :  { %890 = vtanh.f32 %v512_v44 }
 0x203   :  { %892 = vtanh.f32 %v507_v48 }
 0x204   :  { %894 = vtanh.f32 %v517_v49 }
 0x205   :  { %896 = vtanh.f32 %v522_v50 }
 0x20c   :  { %v891_v52 = vpop.eup %890 }
 0x20d   :  { %v554_v54 = vmul.f32 %v891_v52, %v541_v53  ;;  %v893_v55 = vpop.eup %892 }
 0x20e   :  { %v895_v56 = vpop.eup %894  ;;  %v553_v57 = vmul.f32 %v893_v55, %v536_v51 }
 0x20f   :  { %v897_v58 = vpop.eup %896  ;;  %v555_v61 = vmul.f32 %v895_v56, %v546_v59 }
 0x210   :  { %v557_v60 = vadd.f32 %v554_v54, %v553_v57  ;;  %v556_v63 = vmul.f32 %v897_v58, %v551_v62 }
 0x212   :  { %v558_v0 = vadd.f32 %v557_v60, %v555_v61 }
 0x214   :  { %v559_v2 = vadd.f32 %v558_v0, %v556_v63 }
 0x216   :  { %v560_v3 = vrot.slane %v559_v2, 4 }
 0x218   :  { %v561_v6 = vadd.f32 %v560_v3, %v559_v2 }
 0x21a   :  { %v562_v5 = vrot.slane %v561_v6, 2 }
 0x21c   :  { %v563_v8 = vadd.f32 %v562_v5, %v561_v6 }
 0x21e   :  { %v564_v10 = vrot.slane %v563_v8, 1 }
 0x220   :  { %v565_v12 = vadd.f32 %v564_v10, %v563_v8 }
 0x222   :  { %v576_v13 = vadd.f32 %v575_v11, %v565_v12 }
 0x224   :  { %577 = vst [vmem:[#allocation3] sm:$0x1] %v576_v13 }
 0x225   :  { %909 = shalt.err (!%p906_p4)
}
 0x226   :  { %s910_s28 = scalar_lea.hbm %s1254_s9, 16 }
 0x227   :  { %p911_p5 = scmp.ne.s32.totalorder %s1254_s9, %s910_s28  ;;  %p914_p6 = scmp.lt.u32.totalorder %s910_s28, %s1254_s9 }
 0x229   :  { %p916_p7 = pnand %p914_p6, %p911_p5 }
 0x22b   :  { %919 = shalt.err (!%p916_p7)
}
 0x22c   :  { %587 = dma.vmem_to_hbm [thread:$0]  %s585_s23, 16, %s1254_s9, [#allocation4]  }
 0x22d   :  { %920 = dma.done.wait [#allocation4], 16  }
 0x22e   :  { %921 = vsyncadd [#allocation4], 4294967280 }
 0x22f   :  { %591 = vsyncpa [#allocation4], 1 }

</bundles_post_ra>
